<compile_context>
chip_gen: v7x
topology: tpu7x:2x2x1
jax: 0.10.0
libtpu: 0.0.40
codegen_flags: <defaults>
</compile_context>

<pallas_src>
import jax
import jax.numpy as jnp
from jax.experimental import pallas as pl
from jax.experimental.pallas import tpu as pltpu


_LANE = 128                     # TPU vreg lane width
_MAX_LANES = 1024               # lane-dense slab width (large multiple of 128)
_TARGET_BLOCK_BYTES = 2 << 20   # ~2 MiB per block; in+out double-buffered ~= 8 MiB VMEM
_VMEM_LIMIT_BYTES = 32 << 20    # explicit; ample headroom and safe on v5e/v6e/v7x


def _identity_copy_kernel(x_ref, o_ref):
    o_ref[...] = x_ref[...]


def _min_sublane(dtype) -> int:
    # dtype-aware minimum second-to-last block dim: f32 -> 8, bf16 -> 16, int8/fp8 -> 32.
    return max(8, 32 // jnp.dtype(dtype).itemsize)


@jax.jit
def pallas_identity(x: jax.Array) -> jax.Array:
    """Identity pass-through via a Pallas TPU copy kernel (layout-agnostic)."""
    orig_shape = x.shape
    dtype = x.dtype
    n = x.size
    if n == 0:
        return x

    itemsize = jnp.dtype(dtype).itemsize
    sub = _min_sublane(dtype)

    # Wide, lane-dense slab: widest multiple of 128 up to _MAX_LANES.
    lanes = min(_MAX_LANES, pl.cdiv(n, _LANE) * _LANE)
    rows = pl.cdiv(n, lanes)
    pad = rows * lanes - n

    flat = x.reshape(-1)
    if pad:
        # Tail-only pad (no zeros+scatter round-trip); skipped entirely when aligned.
        flat = jnp.pad(flat, (0, pad))
    slab = flat.reshape(rows, lanes)

    # Block rows: dtype-aware multiple of the sublane tile, sized to ~2 MiB.
    rows_per_block = max(sub, (_TARGET_BLOCK_BYTES // (lanes * itemsize)) // sub * sub)
    if rows <= rows_per_block:
        # Single block equal to the full array dims (always a legal block shape).
        # Tiny inputs therefore run as one grid step, which is fine at this size.
        tile_rows = rows
    else:
        tile_rows = rows_per_block
    grid = (pl.cdiv(rows, tile_rows),)

    out = pl.pallas_call(
        _identity_copy_kernel,
        out_shape=jax.ShapeDtypeStruct((rows, lanes), dtype),
        grid=grid,
        in_specs=[pl.BlockSpec((tile_rows, lanes), lambda i: (i, 0))],
        out_specs=pl.BlockSpec((tile_rows, lanes), lambda i: (i, 0)),
        compiler_params=pltpu.CompilerParams(
            dimension_semantics=("parallel",),   # shards grid across 2 TCs on v7x
            vmem_limit_bytes=_VMEM_LIMIT_BYTES,
        ),
        # Alias only when the kernel input is a local padded temp (donatable).
        input_output_aliases=({0: 0} if pad else {}),
    )(slab)

    out_flat = out.reshape(-1)
    if pad:
        out_flat = out_flat[:n]
    return out_flat.reshape(orig_shape)


# ----------------------------------------------------------------------------
# JAX-side mirror of the abstract PyTorch base class
# ----------------------------------------------------------------------------
class Model:
    """JAX/Pallas mirror of UNF.models.model.Model (abstract base class)."""

    def __init__(self):
        # The PyTorch __init__ registers no parameters / submodules.
        self._params = {}

    def forward(self, *args, **kwargs):
        # Exact semantics of the reference: forward is not implemented.
        raise NotImplementedError("Not implemented!!")

    def predict(self, *args, **kwargs):
        raise NotImplementedError("Not implemented!!")

    def get_parameter_names(self):
        return list(self._params.keys())

    def load_state_dict(self, state_dict, strict=True):
        # Strip leading 'model.' prefixes, same as the reference.
        # TODO(synk): the reference delegates to self.model, which the abstract
        # base never defines; we just retain the remapped dict.
        true_state_dict = {}
        for k, v in state_dict.items():
            if k.startswith("model."):
                k = k.split(".", 1)[1]
            true_state_dict[k] = v
        self._params = dict(true_state_dict)

    # Minimal concrete compute path (Pallas): identity on the input tensor.
    def apply_identity(self, x):
        return pallas_identity(x)


if __name__ == "__main__":
    key0, key1 = jax.random.split(jax.random.PRNGKey(0))

    m = Model()

    # 1) Verify abstract-base semantics (forward must raise, no parameters).
    raised = False
    try:
        m.forward(jnp.zeros((1,)))
    except NotImplementedError:
        raised = True
    assert raised, "forward() should raise"
    assert m.get_parameter_names() == []

    # 2) Lane-aligned NCHW input (2*4*16*16 = 2048 -> zero-copy (2, 1024) slab).
    x = jax.random.normal(key0, (2, 4, 16, 16), dtype=jnp.float32)
    y = m.apply_identity(x)
    jax.block_until_ready(y)
    assert y.shape == x.shape and y.dtype == x.dtype
    assert bool(jnp.allclose(y, x)), "identity kernel mismatch (aligned path)"

    # 3) Unaligned bf16 input exercises the tail-pad + aliased path.
    x2 = jax.random.normal(key1, (3, 5, 7), dtype=jnp.bfloat16)
    y2 = m.apply_identity(x2)
    jax.block_until_ready(y2)
    assert y2.shape == x2.shape and y2.dtype == x2.dtype
    assert bool(jnp.array_equal(y2.astype(jnp.float32), x2.astype(jnp.float32))), \
        "identity kernel mismatch (padded path)"

    print("KERNEL_OK")
</pallas_src>

<mosaic_0001>
module attributes {stable_mosaic.version = 11 : i64} {
  func.func @_identity_copy_kernel(%arg0: i32, %arg1: memref<2x1024xf32, #tpu.memory_space<vmem>>, %arg2: memref<2x1024xf32, #tpu.memory_space<vmem>>) attributes {dimension_semantics = [#tpu.dimension_semantics<parallel>], iteration_bounds = array<i64: 1>, scalar_prefetch = 0 : i64, scratch_operands = 0 : i64, tpu.core_type = #tpu.core_type<tc>, window_params = [{transform_indices = @transform_0, window_bounds = array<i64: 2, 1024>}, {transform_indices = @transform_1, window_bounds = array<i64: 2, 1024>}]} {
    %c0 = arith.constant 0 : index
    %c0_0 = arith.constant 0 : index
    %0 = vector.load %arg1[%c0, %c0_0] : memref<2x1024xf32, #tpu.memory_space<vmem>>, vector<2x1024xf32>
    %c0_1 = arith.constant 0 : index
    %c0_2 = arith.constant 0 : index
    %1 = vector.load %arg2[%c0_1, %c0_2] : memref<2x1024xf32, #tpu.memory_space<vmem>>, vector<2x1024xf32>
    tpu.vector_store %arg2[%c0_1, %c0_2], %0 {strides = array<i32>} : memref<2x1024xf32, #tpu.memory_space<vmem>>, vector<2x1024xf32>,
    return
  }
  func.func @transform_0(%arg0: i32) -> (i32, i32) {
    %c0_i32 = arith.constant 0 : i32
    %c0_i32_0 = arith.constant 0 : i32
    return %arg0, %c0_i32 : i32, i32
  }
  func.func @transform_1(%arg0: i32) -> (i32, i32) {
    %c0_i32 = arith.constant 0 : i32
    %c0_i32_0 = arith.constant 0 : i32
    return %arg0, %c0_i32 : i32, i32
  }
}

</mosaic_0001>

<bundles_post_ra>
// kernel: pallas_identity.1
= control target key start
LH: loop header
LB: loop body
LE: loop exit
PB: predicated region body
PF: predicated region fallthrough
CT: control target
= control target key end

     0   :  { %s38_s0 = inlined_call_operand.vmem [shape: f32[2,1024], index: 0, kind: input, shape index: {}]   ;;  %s39_s1 = inlined_call_operand.vmem [shape: f32[2,1024], index: 1, kind: output, shape index: {}]  }
   0x1   :  { %v8_v0 = vld [vmem:[%s38_s0] sm:$0xff]  ;;  %v9_v1 = vld [vmem:[%s38_s0 + $0x8] sm:$0xff] }
   0x2   :  { %10 = vst [vmem:[%s39_s1] sm:$0xff] %v8_v0  ;;  %11 = vst [vmem:[%s39_s1 + $0x8] sm:$0xff] %v9_v1 }

</bundles_post_ra>
